<compile_context>
chip_gen: v6e
topology: v6e:2x2x1
jax: 0.10.0
libtpu: 0.0.40
codegen_flags: <defaults>
</compile_context>

<pallas_src>
import jax
import jax.numpy as jnp
from jax import lax
from jax.experimental import pallas as pl
from jax.experimental.pallas import tpu as pltpu


# ---------------------------------------------------------------------------
# Small helpers
# ---------------------------------------------------------------------------
def _round_up(x, m):
    return ((x + m - 1) // m) * m


def _cdiv(a, b):
    return -(-a // b)


def _vmem_tile_bytes(rows, cols, itemsize):
    # VMEM footprint of a 2-D block: sublanes pad to 8, lanes pad to 128.
    return _round_up(max(rows, 1), 8) * _round_up(max(cols, 1), 128) * itemsize


def _vmem_limit(streamed_bytes, resident_bytes, scratch_bytes):
    # Double-buffered streamed tiles + (conservatively double-buffered) resident
    # weights + in-kernel value scratch + slack.  Clamp to <= 48 MB (v7x VMEM = 64 MiB).
    need = 2 * streamed_bytes + 2 * resident_bytes + scratch_bytes + (4 << 20)
    return int(min(max(need, 16 << 20), 48 << 20))


def _choose_tiles(batch, tb_max, per_row_vmem_bytes):
    """Pick a batch tile (multiple of 8) that minimizes padding and fits VMEM."""
    tb_cap = max(256, (36 << 20) // max(1, 4 * per_row_vmem_bytes))
    tb_cap = max(8, min(tb_cap, tb_max))
    n_tiles = max(1, _cdiv(batch, tb_cap))
    if batch >= 1024:
        n_tiles = max(n_tiles, 2)          # keep both v7x TensorCores busy
    if n_tiles > 1 and n_tiles % 2:
        n_tiles += 1                       # balanced split across 2 TCs
    tb = _round_up(_cdiv(batch, n_tiles), 8)
    bp = tb * n_tiles
    return tb, bp, n_tiles


# ---------------------------------------------------------------------------
# Fused kernel: embedding gather (one-hot MXU matmul) + fc1 + fc2 + fc3
#   h1 = relu( sum_e one_hot(ids_e) @ (table_e @ W1_e)  +  sum_f feats_f @ W1_f  + b1 )
#   h2 = relu( h1 @ W2 + b2 )
#   q  = sum(h2 * w3_row, -1)                      (b3 added in the wrapper)
# All math in f32 with f32 MXU accumulation; bias/ReLU on the VPU in f32.
# ---------------------------------------------------------------------------
def _qnet_fused_kernel(wid_ref, cid_ref, sid_ref, iid_ref,
                       nwf_ref, npf_ref, ncf_ref,
                       tw_ref, tc_ref, ts_ref, ti_ref,
                       w1w_ref, w1p_ref, w1c_ref,
                       b1_ref, w2_ref, b2_ref, w3_ref,
                       o_ref):
    def embed_h1(id_ref, tab_ref):
        # Row gather as a one-hot matmul on the (mostly idle) MXU:
        #   one_hot(ids, N) @ (table @ W1_block)  ==  (table @ W1_block)[ids]
        ids = id_ref[...]                                          # (TB, 1) int32
        n = tab_ref.shape[0]
        row_ids = lax.broadcasted_iota(jnp.int32, (1, n), 1)       # (1, N)
        one_hot = (ids == row_ids).astype(jnp.float32)             # (TB, N)
        return jnp.dot(one_hot, tab_ref[...], preferred_element_type=jnp.float32)

    h1 = embed_h1(wid_ref, tw_ref)
    h1 = h1 + embed_h1(cid_ref, tc_ref)
    h1 = h1 + embed_h1(sid_ref, ts_ref)
    h1 = h1 + embed_h1(iid_ref, ti_ref)
    h1 = h1 + jnp.dot(nwf_ref[...], w1w_ref[...], preferred_element_type=jnp.float32)
    h1 = h1 + jnp.dot(npf_ref[...], w1p_ref[...], preferred_element_type=jnp.float32)
    h1 = h1 + jnp.dot(ncf_ref[...], w1c_ref[...], preferred_element_type=jnp.float32)
    h1 = jnp.maximum(h1 + b1_ref[...], 0.0)                        # fc1 bias + ReLU (f32)
    # dropout1: identity in eval mode
    h2 = jnp.dot(h1, w2_ref[...], preferred_element_type=jnp.float32)
    h2 = jnp.maximum(h2 + b2_ref[...], 0.0)                        # fc2 bias + ReLU (f32)
    # dropout2: identity in eval mode
    # fc3 (K=32, N=1): VPU multiply + XLU lane reduction instead of an N=1 MXU matmul.
    q = jnp.sum(h2 * w3_ref[...], axis=-1, keepdims=True)          # (TB, 1) f32
    o_ref[...] = q.astype(o_ref.dtype)


def qnet_fused_forward(wids, cids, sids, iids, nwf, npf, ncf,
                       tw, tc, ts, ti, w1w, w1p, w1c, b1, w2, b2, w3row,
                       *, tb_max=2048):
    B = wids.shape[0]
    f1 = b1.shape[1]
    f2 = b2.shape[1]
    n_w, n_p, n_c = nwf.shape[1], npf.shape[1], ncf.shape[1]

    # Per-batch-row VMEM footprint of the streamed buffers (lanes pad to 128).
    per_row = (4 * 128 * 4                                          # four (tb,1) i32 id columns
               + sum(_round_up(n, 128) * 4 for n in (n_w, n_p, n_c))
               + 128 * 4)                                           # (tb,1) f32 output
    tb, bp, n_tiles = _choose_tiles(B, tb_max, per_row)

    streamed = [wids, cids, sids, iids, nwf, npf, ncf]
    if bp != B:
        streamed = [jnp.pad(a, ((0, bp - B), (0, 0))) for a in streamed]
    consts = [tw, tc, ts, ti, w1w, w1p, w1c, b1, w2, b2, w3row]

    streamed_vmem = per_row * tb
    resident_vmem = sum(_vmem_tile_bytes(a.shape[0], a.shape[1], a.dtype.itemsize)
                        for a in consts)
    max_rows = max(tw.shape[0], tc.shape[0], ts.shape[0], ti.shape[0])
    scratch_vmem = _vmem_tile_bytes(tb, max_rows, 4) + 4 * _vmem_tile_bytes(tb, f1, 4)
    vmem_limit = _vmem_limit(streamed_vmem, resident_vmem, scratch_vmem)

    rows_total = tw.shape[0] + tc.shape[0] + ts.shape[0] + ti.shape[0]
    flops = 2 * bp * (rows_total * f1 + (n_w + n_p + n_c) * f1 + f1 * f2 + f2)
    bytes_accessed = (bp * (16 + 4 * (n_w + n_p + n_c) + 4)
                      + sum(int(a.size) * a.dtype.itemsize for a in consts))

    def stream_spec(cols):
        return pl.BlockSpec((tb, cols), lambda i: (i, 0))

    def const_spec(a):
        return pl.BlockSpec(a.shape, lambda i: (0, 0))

    out = pl.pallas_call(
        _qnet_fused_kernel,
        out_shape=jax.ShapeDtypeStruct((bp, 1), jnp.float32),
        grid=(n_tiles,),
        in_specs=([stream_spec(1)] * 4
                  + [stream_spec(n_w), stream_spec(n_p), stream_spec(n_c)]
                  + [const_spec(a) for a in consts]),
        out_specs=pl.BlockSpec((tb, 1), lambda i: (i, 0)),
        compiler_params=pltpu.CompilerParams(
            dimension_semantics=("parallel",),
            vmem_limit_bytes=vmem_limit),
        cost_estimate=pl.CostEstimate(flops=int(flops), transcendentals=0,
                                      bytes_accessed=int(bytes_accessed)),
    )(*streamed, *consts)

    return out if bp == B else out[:B]


# ---------------------------------------------------------------------------
# Fallback kernel (tables too large to keep VMEM-resident): MLP head only.
#   x (pre-gathered/concatenated features) streams over batch tiles.
# ---------------------------------------------------------------------------
def _qnet_mlp_kernel(x_ref, w1_ref, b1_ref, w2_ref, b2_ref, w3_ref, o_ref):
    x = x_ref[...]                                                  # (TB, din) compute dtype
    h1 = jnp.dot(x, w1_ref[...], preferred_element_type=jnp.float32)
    h1 = jnp.maximum(h1 + b1_ref[...], 0.0)                         # f32 bias + ReLU
    # dropout1: identity in eval mode
    h1 = h1.astype(x.dtype)
    h2 = jnp.dot(h1, w2_ref[...], preferred_element_type=jnp.float32)
    h2 = jnp.maximum(h2 + b2_ref[...], 0.0)
    # dropout2: identity in eval mode
    q = jnp.sum(h2 * w3_ref[...], axis=-1, keepdims=True)           # (TB, 1) f32
    o_ref[...] = q.astype(o_ref.dtype)


def qnet_mlp_forward(x, w1, b1, w2, b2, w3row, *, tb_max=2048):
    B, din = x.shape
    f1 = w1.shape[1]
    f2 = w2.shape[1]

    per_row = _round_up(din, 128) * x.dtype.itemsize + 128 * 4
    tb, bp, n_tiles = _choose_tiles(B, tb_max, per_row)
    if bp != B:
        x = jnp.pad(x, ((0, bp - B), (0, 0)))

    streamed_vmem = per_row * tb
    resident_vmem = (_vmem_tile_bytes(din, f1, w1.dtype.itemsize)
                     + _vmem_tile_bytes(1, f1, 4)
                     + _vmem_tile_bytes(f1, f2, w2.dtype.itemsize)
                     + 2 * _vmem_tile_bytes(1, f2, 4))
    scratch_vmem = 2 * _vmem_tile_bytes(tb, f1, 4) + _vmem_tile_bytes(tb, f2, 4)
    vmem_limit = _vmem_limit(streamed_vmem, resident_vmem, scratch_vmem)

    flops = 2 * bp * (din * f1 + f1 * f2 + f2)
    bytes_accessed = (bp * din * x.dtype.itemsize
                      + int(w1.size) * w1.dtype.itemsize + int(w2.size) * w2.dtype.itemsize
                      + (int(b1.size) + int(b2.size) + int(w3row.size)) * 4
                      + bp * 4)

    out = pl.pallas_call(
        _qnet_mlp_kernel,
        out_shape=jax.ShapeDtypeStruct((bp, 1), jnp.float32),
        grid=(n_tiles,),
        in_specs=[
            pl.BlockSpec((tb, din), lambda i: (i, 0)),   # x: streamed over batch tiles
            pl.BlockSpec((din, f1), lambda i: (0, 0)),   # W1: VMEM-resident
            pl.BlockSpec((1, f1),   lambda i: (0, 0)),   # b1
            pl.BlockSpec((f1, f2),  lambda i: (0, 0)),   # W2
            pl.BlockSpec((1, f2),   lambda i: (0, 0)),   # b2
            pl.BlockSpec((1, f2),   lambda i: (0, 0)),   # w3 row
        ],
        out_specs=pl.BlockSpec((tb, 1), lambda i: (i, 0)),
        compiler_params=pltpu.CompilerParams(
            dimension_semantics=("parallel",),
            vmem_limit_bytes=vmem_limit),
        cost_estimate=pl.CostEstimate(flops=int(flops), transcendentals=0,
                                      bytes_accessed=int(bytes_accessed)),
    )(x, w1, b1, w2, b2, w3row)

    return out if bp == B else out[:B]


# ---------------------------------------------------------------------------
# Module wrapper (parameter container + forward)
# ---------------------------------------------------------------------------
class QNetworkWithEmbeddingsPallas:
    def __init__(self,
                 num_workers_embed_size, num_categories_embed_size,
                 num_sub_categories_embed_size, num_industries_embed_size,
                 worker_embed_dim, cat_embed_dim, sub_cat_embed_dim, ind_embed_dim,
                 num_numeric_worker_features, num_numeric_project_features,
                 num_numeric_context_features, seed,
                 fc1_units=128, fc2_units=32,
                 compute_dtype=jnp.bfloat16, tb_max=2048,
                 max_fused_table_rows=2048, fused_table_budget_bytes=24 << 20,
                 force_fallback=False):
        key = jax.random.PRNGKey(seed)
        ks = jax.random.split(key, 10)

        def uniform(k, shape, bound):
            return jax.random.uniform(k, shape, jnp.float32, -bound, bound)

        # Embedding tables (PyTorch nn.Embedding init ~ N(0,1)).
        self.worker_embedding = jax.random.normal(
            ks[0], (num_workers_embed_size, worker_embed_dim), jnp.float32)
        self.category_embedding = jax.random.normal(
            ks[1], (num_categories_embed_size, cat_embed_dim), jnp.float32)
        self.sub_category_embedding = jax.random.normal(
            ks[2], (num_sub_categories_embed_size, sub_cat_embed_dim), jnp.float32)
        self.industry_embedding = jax.random.normal(
            ks[3], (num_industries_embed_size, ind_embed_dim), jnp.float32)

        embed_dims = (worker_embed_dim, cat_embed_dim, sub_cat_embed_dim, ind_embed_dim)
        num_dims = (num_numeric_worker_features, num_numeric_project_features,
                    num_numeric_context_features)
        fc_input_dim = sum(embed_dims) + sum(num_dims)
        self.fc_input_dim = fc_input_dim
        self.compute_dtype = compute_dtype
        self.tb_max = tb_max

        # Linear layers stored as [in, out] so the kernel computes x @ W + b
        # (== PyTorch x @ W.T + b).  Master copies are f32.
        b1b = 1.0 / (fc_input_dim ** 0.5)
        self.w1 = uniform(ks[4], (fc_input_dim, fc1_units), b1b)
        self.b1 = uniform(ks[5], (1, fc1_units), b1b)
        b2b = 1.0 / (fc1_units ** 0.5)
        self.w2 = uniform(ks[6], (fc1_units, fc2_units), b2b)
        self.b2 = uniform(ks[7], (1, fc2_units), b2b)
        b3b = 1.0 / (fc2_units ** 0.5)
        self.w3 = uniform(ks[8], (fc2_units, 1), b3b)
        self.b3 = uniform(ks[9], (1, 1), b3b)
        self.w3_row = self.w3.T                       # (1, fc2_units)

        # ---- fused-path parameters: fold each embedding table into its W1 row-block ----
        hp = lax.Precision.HIGHEST

        def pad_rows8(t):
            r = _round_up(t.shape[0], 8)
            return t if r == t.shape[0] else jnp.pad(t, ((0, r - t.shape[0]), (0, 0)))

        tables = (self.worker_embedding, self.category_embedding,
                  self.sub_category_embedding, self.industry_embedding)
        fused = []
        off = 0
        for tab, d in zip(tables, embed_dims):
            fused.append(jnp.dot(pad_rows8(tab), self.w1[off:off + d], precision=hp))
            off += d
        self.fused_tables = tuple(fused)              # each (N_pad8, fc1_units) f32

        w1_num = []
        for d in num_dims:
            w1_num.append(self.w1[off:off + d])
            off += d
        self.w1_num = tuple(w1_num)                   # W1 row-blocks for numeric features

        max_rows = max(t.shape[0] for t in self.fused_tables)
        fused_bytes = sum(int(t.size) * 4 for t in self.fused_tables)
        self.use_fused = ((not force_fallback)
                          and max_rows <= max_fused_table_rows
                          and fused_bytes <= fused_table_budget_bytes)
        # TODO(synk): for very large tables, an in-kernel jnp.take / DMA row-gather path
        # would avoid both the one-hot blow-up and the plain-JAX gather fallback.

        # ---- fallback-path parameters (streamed x in compute_dtype) ----
        self.w1_k = self.w1.astype(compute_dtype)
        self.w2_k = self.w2.astype(compute_dtype)

    def __call__(self, worker_ids, cat_ids, sub_cat_ids, ind_ids,
                 numeric_worker_feats, numeric_project_feats, numeric_context_feats):
        ids = tuple(a.reshape(-1, 1).astype(jnp.int32)
                    for a in (worker_ids, cat_ids, sub_cat_ids, ind_ids))
        feats = tuple(a.astype(jnp.float32)
                      for a in (numeric_worker_feats, numeric_project_feats,
                                numeric_context_feats))

        if self.use_fused:
            q = qnet_fused_forward(*ids, *feats,
                                   *self.fused_tables, *self.w1_num,
                                   self.b1, self.w2, self.b2, self.w3_row,
                                   tb_max=self.tb_max)
        else:
            # Fallback: plain-JAX gather, cast each piece BEFORE the concat, stream x.
            dt = self.compute_dtype
            pieces = [self.worker_embedding[ids[0][:, 0]].astype(dt),
                      self.category_embedding[ids[1][:, 0]].astype(dt),
                      self.sub_category_embedding[ids[2][:, 0]].astype(dt),
                      self.industry_embedding[ids[3][:, 0]].astype(dt),
                      feats[0].astype(dt), feats[1].astype(dt), feats[2].astype(dt)]
            x = jnp.concatenate(pieces, axis=1)       # (B, fc_input_dim) compute dtype
            q = qnet_mlp_forward(x, self.w1_k, self.b1, self.w2_k, self.b2, self.w3_row,
                                 tb_max=self.tb_max)

        return q + self.b3                            # fc3 bias added outside the kernel


# ---------------------------------------------------------------------------
# Pure-JAX reference (f32, highest-precision matmuls) for correctness checks
# ---------------------------------------------------------------------------
def reference_forward(net, worker_ids, cat_ids, sub_cat_ids, ind_ids, nw, np_, nc):
    hp = lax.Precision.HIGHEST
    w_embed = net.worker_embedding[worker_ids.reshape(-1)]
    c_embed = net.category_embedding[cat_ids.reshape(-1)]
    s_embed = net.sub_category_embedding[sub_cat_ids.reshape(-1)]
    i_embed = net.industry_embedding[ind_ids.reshape(-1)]
    x = jnp.concatenate([w_embed, c_embed, s_embed, i_embed, nw, np_, nc], axis=1)
    h1 = jax.nn.relu(jnp.dot(x, net.w1, precision=hp) + net.b1)
    h2 = jax.nn.relu(jnp.dot(h1, net.w2, precision=hp) + net.b2)
    return jnp.dot(h2, net.w3, precision=hp) + net.b3


if __name__ == "__main__":
    B = 8
    num_workers, num_cats, num_subcats, num_inds = 50, 10, 20, 15
    worker_dim, cat_dim, subcat_dim, ind_dim = 16, 8, 8, 8
    n_worker_feats, n_project_feats, n_context_feats = 8, 8, 8

    cfg = (num_workers, num_cats, num_subcats, num_inds,
           worker_dim, cat_dim, subcat_dim, ind_dim,
           n_worker_feats, n_project_feats, n_context_feats)

    key = jax.random.PRNGKey(0)
    k = jax.random.split(key, 7)
    worker_ids = jax.random.randint(k[0], (B, 1), 0, num_workers, jnp.int32)
    cat_ids = jax.random.randint(k[1], (B, 1), 0, num_cats, jnp.int32)
    sub_cat_ids = jax.random.randint(k[2], (B, 1), 0, num_subcats, jnp.int32)
    ind_ids = jax.random.randint(k[3], (B, 1), 0, num_inds, jnp.int32)
    numeric_worker_feats = jax.random.normal(k[4], (B, n_worker_feats), jnp.float32)
    numeric_project_feats = jax.random.normal(k[5], (B, n_project_feats), jnp.float32)
    numeric_context_feats = jax.random.normal(k[6], (B, n_context_feats), jnp.float32)

    args = (worker_ids, cat_ids, sub_cat_ids, ind_ids,
            numeric_worker_feats, numeric_project_feats, numeric_context_feats)

    # Default: fused gather+MLP kernel, f32 in-kernel math.
    net = QNetworkWithEmbeddingsPallas(*cfg, seed=0)
    assert net.use_fused
    ref = jax.block_until_ready(reference_forward(net, *args))

    out = jax.block_until_ready(net(*args))
    assert out.shape == (B, 1), out.shape
    # Tolerance covers MXU f32 pass precision / summation-order differences.
    assert jnp.allclose(out, ref, atol=1e-2, rtol=1e-2), (out, ref)

    # Fallback path (plain-JAX gather + MLP-only kernel), f32 streamed compute.
    net_fb = QNetworkWithEmbeddingsPallas(*cfg, seed=0, compute_dtype=jnp.float32,
                                          force_fallback=True)
    assert not net_fb.use_fused
    out_fb = jax.block_until_ready(net_fb(*args))
    assert out_fb.shape == (B, 1), out_fb.shape
    assert jnp.allclose(out_fb, ref, atol=1e-2, rtol=1e-2), (out_fb, ref)

    # Fallback path with the default bf16 streamed compute dtype (HBM-BW optimization):
    # deliberate precision choice, loose check.
    net_bf16 = QNetworkWithEmbeddingsPallas(*cfg, seed=0, force_fallback=True)
    out_bf16 = jax.block_until_ready(net_bf16(*args))
    assert out_bf16.shape == (B, 1), out_bf16.shape
    assert float(jnp.max(jnp.abs(out_bf16 - ref))) < 1e-1, (out_bf16, ref)

    print("KERNEL_OK")
</pallas_src>

<mosaic_0001>
module attributes {stable_mosaic.version = 11 : i64} {
  func.func @_qnet_fused_kernel(%arg0: i32, %arg1: memref<8x1xi32, #tpu.memory_space<vmem>>, %arg2: memref<8x1xi32, #tpu.memory_space<vmem>>, %arg3: memref<8x1xi32, #tpu.memory_space<vmem>>, %arg4: memref<8x1xi32, #tpu.memory_space<vmem>>, %arg5: memref<8x8xf32, #tpu.memory_space<vmem>>, %arg6: memref<8x8xf32, #tpu.memory_space<vmem>>, %arg7: memref<8x8xf32, #tpu.memory_space<vmem>>, %arg8: memref<56x128xf32, #tpu.memory_space<vmem>>, %arg9: memref<16x128xf32, #tpu.memory_space<vmem>>, %arg10: memref<24x128xf32, #tpu.memory_space<vmem>>, %arg11: memref<16x128xf32, #tpu.memory_space<vmem>>, %arg12: memref<8x128xf32, #tpu.memory_space<vmem>>, %arg13: memref<8x128xf32, #tpu.memory_space<vmem>>, %arg14: memref<8x128xf32, #tpu.memory_space<vmem>>, %arg15: memref<1x128xf32, #tpu.memory_space<vmem>>, %arg16: memref<128x32xf32, #tpu.memory_space<vmem>>, %arg17: memref<1x32xf32, #tpu.memory_space<vmem>>, %arg18: memref<1x32xf32, #tpu.memory_space<vmem>>, %arg19: memref<8x1xf32, #tpu.memory_space<vmem>>) attributes {dimension_semantics = [#tpu.dimension_semantics<parallel>], iteration_bounds = array<i64: 1>, scalar_prefetch = 0 : i64, scratch_operands = 0 : i64, tpu.core_type = #tpu.core_type<tc>, window_params = [{transform_indices = @transform_0, window_bounds = array<i64: 8, 1>}, {transform_indices = @transform_1, window_bounds = array<i64: 8, 1>}, {transform_indices = @transform_2, window_bounds = array<i64: 8, 1>}, {transform_indices = @transform_3, window_bounds = array<i64: 8, 1>}, {transform_indices = @transform_4, window_bounds = array<i64: 8, 8>}, {transform_indices = @transform_5, window_bounds = array<i64: 8, 8>}, {transform_indices = @transform_6, window_bounds = array<i64: 8, 8>}, {pipeline_mode = #tpu.pipeline_mode<synchronous>, transform_indices = @transform_7, window_bounds = array<i64: 56, 128>}, {pipeline_mode = #tpu.pipeline_mode<synchronous>, transform_indices = @transform_8, window_bounds = array<i64: 16, 128>}, {pipeline_mode = #tpu.pipeline_mode<synchronous>, transform_indices = @transform_9, window_bounds = array<i64: 24, 128>}, {pipeline_mode = #tpu.pipeline_mode<synchronous>, transform_indices = @transform_10, window_bounds = array<i64: 16, 128>}, {pipeline_mode = #tpu.pipeline_mode<synchronous>, transform_indices = @transform_11, window_bounds = array<i64: 8, 128>}, {pipeline_mode = #tpu.pipeline_mode<synchronous>, transform_indices = @transform_12, window_bounds = array<i64: 8, 128>}, {pipeline_mode = #tpu.pipeline_mode<synchronous>, transform_indices = @transform_13, window_bounds = array<i64: 8, 128>}, {pipeline_mode = #tpu.pipeline_mode<synchronous>, transform_indices = @transform_14, window_bounds = array<i64: 1, 128>}, {pipeline_mode = #tpu.pipeline_mode<synchronous>, transform_indices = @transform_15, window_bounds = array<i64: 128, 32>}, {pipeline_mode = #tpu.pipeline_mode<synchronous>, transform_indices = @transform_16, window_bounds = array<i64: 1, 32>}, {pipeline_mode = #tpu.pipeline_mode<synchronous>, transform_indices = @transform_17, window_bounds = array<i64: 1, 32>}, {transform_indices = @transform_18, window_bounds = array<i64: 8, 1>}]} {
    %c0 = arith.constant 0 : index
    %c0_0 = arith.constant 0 : index
    %0 = vector.load %arg1[%c0, %c0_0] : memref<8x1xi32, #tpu.memory_space<vmem>>, vector<8x1xi32>
    %1 = tpu.iota {dimensions = array<i32: 1>} : vector<1x56xi32>
    %2 = vector.broadcast %0 : vector<8x1xi32> to vector<8x56xi32>
    %3 = vector.broadcast %1 : vector<1x56xi32> to vector<8x56xi32>
    %4 = arith.cmpi eq, %2, %3 : vector<8x56xi32>
    %5 = arith.extui %4 : vector<8x56xi1> to vector<8x56xi32>
    %6 = arith.sitofp %5 : vector<8x56xi32> to vector<8x56xf32>
    %c0_1 = arith.constant 0 : index
    %c0_2 = arith.constant 0 : index
    %7 = vector.load %arg8[%c0_1, %c0_2] : memref<56x128xf32, #tpu.memory_space<vmem>>, vector<56x128xf32>
    %cst = arith.constant dense<0.000000e+00> : vector<8x128xf32>
    %8 = tpu.matmul %6, %7, %cst {dimension_numbers = #tpu.dot_dimension_numbers<[1], [0], [0], [1], [0, 0, 1, 1], [], []>} : vector<8x56xf32>, vector<56x128xf32>, vector<8x128xf32> -> vector<8x128xf32>
    %c0_3 = arith.constant 0 : index
    %c0_4 = arith.constant 0 : index
    %9 = vector.load %arg2[%c0_3, %c0_4] : memref<8x1xi32, #tpu.memory_space<vmem>>, vector<8x1xi32>
    %10 = tpu.iota {dimensions = array<i32: 1>} : vector<1x16xi32>
    %11 = vector.broadcast %9 : vector<8x1xi32> to vector<8x16xi32>
    %12 = vector.broadcast %10 : vector<1x16xi32> to vector<8x16xi32>
    %13 = arith.cmpi eq, %11, %12 : vector<8x16xi32>
    %14 = arith.extui %13 : vector<8x16xi1> to vector<8x16xi32>
    %15 = arith.sitofp %14 : vector<8x16xi32> to vector<8x16xf32>
    %c0_5 = arith.constant 0 : index
    %c0_6 = arith.constant 0 : index
    %16 = vector.load %arg9[%c0_5, %c0_6] : memref<16x128xf32, #tpu.memory_space<vmem>>, vector<16x128xf32>
    %cst_7 = arith.constant dense<0.000000e+00> : vector<8x128xf32>
    %17 = tpu.matmul %15, %16, %cst_7 {dimension_numbers = #tpu.dot_dimension_numbers<[1], [0], [0], [1], [0, 0, 1, 1], [], []>} : vector<8x16xf32>, vector<16x128xf32>, vector<8x128xf32> -> vector<8x128xf32>
    %18 = arith.addf %8, %17 : vector<8x128xf32>
    %c0_8 = arith.constant 0 : index
    %c0_9 = arith.constant 0 : index
    %19 = vector.load %arg3[%c0_8, %c0_9] : memref<8x1xi32, #tpu.memory_space<vmem>>, vector<8x1xi32>
    %20 = tpu.iota {dimensions = array<i32: 1>} : vector<1x24xi32>
    %21 = vector.broadcast %19 : vector<8x1xi32> to vector<8x24xi32>
    %22 = vector.broadcast %20 : vector<1x24xi32> to vector<8x24xi32>
    %23 = arith.cmpi eq, %21, %22 : vector<8x24xi32>
    %24 = arith.extui %23 : vector<8x24xi1> to vector<8x24xi32>
    %25 = arith.sitofp %24 : vector<8x24xi32> to vector<8x24xf32>
    %c0_10 = arith.constant 0 : index
    %c0_11 = arith.constant 0 : index
    %26 = vector.load %arg10[%c0_10, %c0_11] : memref<24x128xf32, #tpu.memory_space<vmem>>, vector<24x128xf32>
    %cst_12 = arith.constant dense<0.000000e+00> : vector<8x128xf32>
    %27 = tpu.matmul %25, %26, %cst_12 {dimension_numbers = #tpu.dot_dimension_numbers<[1], [0], [0], [1], [0, 0, 1, 1], [], []>} : vector<8x24xf32>, vector<24x128xf32>, vector<8x128xf32> -> vector<8x128xf32>
    %28 = arith.addf %18, %27 : vector<8x128xf32>
    %c0_13 = arith.constant 0 : index
    %c0_14 = arith.constant 0 : index
    %29 = vector.load %arg4[%c0_13, %c0_14] : memref<8x1xi32, #tpu.memory_space<vmem>>, vector<8x1xi32>
    %30 = tpu.iota {dimensions = array<i32: 1>} : vector<1x16xi32>
    %31 = vector.broadcast %29 : vector<8x1xi32> to vector<8x16xi32>
    %32 = vector.broadcast %30 : vector<1x16xi32> to vector<8x16xi32>
    %33 = arith.cmpi eq, %31, %32 : vector<8x16xi32>
    %34 = arith.extui %33 : vector<8x16xi1> to vector<8x16xi32>
    %35 = arith.sitofp %34 : vector<8x16xi32> to vector<8x16xf32>
    %c0_15 = arith.constant 0 : index
    %c0_16 = arith.constant 0 : index
    %36 = vector.load %arg11[%c0_15, %c0_16] : memref<16x128xf32, #tpu.memory_space<vmem>>, vector<16x128xf32>
    %cst_17 = arith.constant dense<0.000000e+00> : vector<8x128xf32>
    %37 = tpu.matmul %35, %36, %cst_17 {dimension_numbers = #tpu.dot_dimension_numbers<[1], [0], [0], [1], [0, 0, 1, 1], [], []>} : vector<8x16xf32>, vector<16x128xf32>, vector<8x128xf32> -> vector<8x128xf32>
    %38 = arith.addf %28, %37 : vector<8x128xf32>
    %c0_18 = arith.constant 0 : index
    %c0_19 = arith.constant 0 : index
    %39 = vector.load %arg5[%c0_18, %c0_19] : memref<8x8xf32, #tpu.memory_space<vmem>>, vector<8x8xf32>
    %c0_20 = arith.constant 0 : index
    %c0_21 = arith.constant 0 : index
    %40 = vector.load %arg12[%c0_20, %c0_21] : memref<8x128xf32, #tpu.memory_space<vmem>>, vector<8x128xf32>
    %cst_22 = arith.constant dense<0.000000e+00> : vector<8x128xf32>
    %41 = tpu.matmul %39, %40, %cst_22 {dimension_numbers = #tpu.dot_dimension_numbers<[1], [0], [0], [1], [0, 0, 1, 1], [], []>} : vector<8x8xf32>, vector<8x128xf32>, vector<8x128xf32> -> vector<8x128xf32>
    %42 = arith.addf %38, %41 : vector<8x128xf32>
    %c0_23 = arith.constant 0 : index
    %c0_24 = arith.constant 0 : index
    %43 = vector.load %arg6[%c0_23, %c0_24] : memref<8x8xf32, #tpu.memory_space<vmem>>, vector<8x8xf32>
    %c0_25 = arith.constant 0 : index
    %c0_26 = arith.constant 0 : index
    %44 = vector.load %arg13[%c0_25, %c0_26] : memref<8x128xf32, #tpu.memory_space<vmem>>, vector<8x128xf32>
    %cst_27 = arith.constant dense<0.000000e+00> : vector<8x128xf32>
    %45 = tpu.matmul %43, %44, %cst_27 {dimension_numbers = #tpu.dot_dimension_numbers<[1], [0], [0], [1], [0, 0, 1, 1], [], []>} : vector<8x8xf32>, vector<8x128xf32>, vector<8x128xf32> -> vector<8x128xf32>
    %46 = arith.addf %42, %45 : vector<8x128xf32>
    %c0_28 = arith.constant 0 : index
    %c0_29 = arith.constant 0 : index
    %47 = vector.load %arg7[%c0_28, %c0_29] : memref<8x8xf32, #tpu.memory_space<vmem>>, vector<8x8xf32>
    %c0_30 = arith.constant 0 : index
    %c0_31 = arith.constant 0 : index
    %48 = vector.load %arg14[%c0_30, %c0_31] : memref<8x128xf32, #tpu.memory_space<vmem>>, vector<8x128xf32>
    %cst_32 = arith.constant dense<0.000000e+00> : vector<8x128xf32>
    %49 = tpu.matmul %47, %48, %cst_32 {dimension_numbers = #tpu.dot_dimension_numbers<[1], [0], [0], [1], [0, 0, 1, 1], [], []>} : vector<8x8xf32>, vector<8x128xf32>, vector<8x128xf32> -> vector<8x128xf32>
    %50 = arith.addf %46, %49 : vector<8x128xf32>
    %c0_33 = arith.constant 0 : index
    %c0_34 = arith.constant 0 : index
    %51 = vector.load %arg15[%c0_33, %c0_34] : memref<1x128xf32, #tpu.memory_space<vmem>>, vector<1x128xf32>
    %52 = vector.broadcast %51 : vector<1x128xf32> to vector<8x128xf32>
    %53 = arith.addf %50, %52 : vector<8x128xf32>
    %cst_35 = arith.constant 0.000000e+00 : f32
    %54 = vector.broadcast %cst_35 : f32 to vector<8x128xf32>
    %55 = arith.maximumf %53, %54 : vector<8x128xf32>
    %c0_36 = arith.constant 0 : index
    %c0_37 = arith.constant 0 : index
    %56 = vector.load %arg16[%c0_36, %c0_37] : memref<128x32xf32, #tpu.memory_space<vmem>>, vector<128x32xf32>
    %cst_38 = arith.constant dense<0.000000e+00> : vector<8x32xf32>
    %57 = tpu.matmul %55, %56, %cst_38 {dimension_numbers = #tpu.dot_dimension_numbers<[1], [0], [0], [1], [0, 0, 1, 1], [], []>} : vector<8x128xf32>, vector<128x32xf32>, vector<8x32xf32> -> vector<8x32xf32>
    %c0_39 = arith.constant 0 : index
    %c0_40 = arith.constant 0 : index
    %58 = vector.load %arg17[%c0_39, %c0_40] : memref<1x32xf32, #tpu.memory_space<vmem>>, vector<1x32xf32>
    %59 = vector.broadcast %58 : vector<1x32xf32> to vector<8x32xf32>
    %60 = arith.addf %57, %59 : vector<8x32xf32>
    %cst_41 = arith.constant 0.000000e+00 : f32
    %61 = vector.broadcast %cst_41 : f32 to vector<8x32xf32>
    %62 = arith.maximumf %60, %61 : vector<8x32xf32>
    %c0_42 = arith.constant 0 : index
    %c0_43 = arith.constant 0 : index
    %63 = vector.load %arg18[%c0_42, %c0_43] : memref<1x32xf32, #tpu.memory_space<vmem>>, vector<1x32xf32>
    %64 = vector.broadcast %63 : vector<1x32xf32> to vector<8x32xf32>
    %65 = arith.mulf %62, %64 : vector<8x32xf32>
    %cst_44 = arith.constant dense<0.000000e+00> : vector<8xf32>
    %66 = vector.multi_reduction <add>, %65, %cst_44 [1] : vector<8x32xf32> to vector<8xf32>
    %67 = vector.shape_cast %66 : vector<8xf32> to vector<8x1xf32>
    %c0_45 = arith.constant 0 : index
    %c0_46 = arith.constant 0 : index
    %68 = vector.load %arg19[%c0_45, %c0_46] : memref<8x1xf32, #tpu.memory_space<vmem>>, vector<8x1xf32>
    tpu.vector_store %arg19[%c0_45, %c0_46], %67 {strides = array<i32>} : memref<8x1xf32, #tpu.memory_space<vmem>>, vector<8x1xf32>,
    return
  }
  func.func @transform_0(%arg0: i32) -> (i32, i32) {
    %c0_i32 = arith.constant 0 : i32
    %c0_i32_0 = arith.constant 0 : i32
    return %arg0, %c0_i32 : i32, i32
  }
  func.func @transform_1(%arg0: i32) -> (i32, i32) {
    %c0_i32 = arith.constant 0 : i32
    %c0_i32_0 = arith.constant 0 : i32
    return %arg0, %c0_i32 : i32, i32
  }
  func.func @transform_2(%arg0: i32) -> (i32, i32) {
    %c0_i32 = arith.constant 0 : i32
    %c0_i32_0 = arith.constant 0 : i32
    return %arg0, %c0_i32 : i32, i32
  }
  func.func @transform_3(%arg0: i32) -> (i32, i32) {
    %c0_i32 = arith.constant 0 : i32
    %c0_i32_0 = arith.constant 0 : i32
    return %arg0, %c0_i32 : i32, i32
  }
  func.func @transform_4(%arg0: i32) -> (i32, i32) {
    %c0_i32 = arith.constant 0 : i32
    %c0_i32_0 = arith.constant 0 : i32
    return %arg0, %c0_i32 : i32, i32
  }
  func.func @transform_5(%arg0: i32) -> (i32, i32) {
    %c0_i32 = arith.constant 0 : i32
    %c0_i32_0 = arith.constant 0 : i32
    return %arg0, %c0_i32 : i32, i32
  }
  func.func @transform_6(%arg0: i32) -> (i32, i32) {
    %c0_i32 = arith.constant 0 : i32
    %c0_i32_0 = arith.constant 0 : i32
    return %arg0, %c0_i32 : i32, i32
  }
  func.func @transform_7(%arg0: i32) -> (i32, i32) {
    %c0_i32 = arith.constant 0 : i32
    %c0_i32_0 = arith.constant 0 : i32
    %c0_i32_1 = arith.constant 0 : i32
    return %c0_i32, %c0_i32_0 : i32, i32
  }
  func.func @transform_8(%arg0: i32) -> (i32, i32) {
    %c0_i32 = arith.constant 0 : i32
    %c0_i32_0 = arith.constant 0 : i32
    %c0_i32_1 = arith.constant 0 : i32
    return %c0_i32, %c0_i32_0 : i32, i32
  }
  func.func @transform_9(%arg0: i32) -> (i32, i32) {
    %c0_i32 = arith.constant 0 : i32
    %c0_i32_0 = arith.constant 0 : i32
    %c0_i32_1 = arith.constant 0 : i32
    return %c0_i32, %c0_i32_0 : i32, i32
  }
  func.func @transform_10(%arg0: i32) -> (i32, i32) {
    %c0_i32 = arith.constant 0 : i32
    %c0_i32_0 = arith.constant 0 : i32
    %c0_i32_1 = arith.constant 0 : i32
    return %c0_i32, %c0_i32_0 : i32, i32
  }
  func.func @transform_11(%arg0: i32) -> (i32, i32) {
    %c0_i32 = arith.constant 0 : i32
    %c0_i32_0 = arith.constant 0 : i32
    %c0_i32_1 = arith.constant 0 : i32
    return %c0_i32, %c0_i32_0 : i32, i32
  }
  func.func @transform_12(%arg0: i32) -> (i32, i32) {
    %c0_i32 = arith.constant 0 : i32
    %c0_i32_0 = arith.constant 0 : i32
    %c0_i32_1 = arith.constant 0 : i32
    return %c0_i32, %c0_i32_0 : i32, i32
  }
  func.func @transform_13(%arg0: i32) -> (i32, i32) {
    %c0_i32 = arith.constant 0 : i32
    %c0_i32_0 = arith.constant 0 : i32
    %c0_i32_1 = arith.constant 0 : i32
    return %c0_i32, %c0_i32_0 : i32, i32
  }
  func.func @transform_14(%arg0: i32) -> (i32, i32) {
    %c0_i32 = arith.constant 0 : i32
    %c0_i32_0 = arith.constant 0 : i32
    %c0_i32_1 = arith.constant 0 : i32
    return %c0_i32, %c0_i32_0 : i32, i32
  }
  func.func @transform_15(%arg0: i32) -> (i32, i32) {
    %c0_i32 = arith.constant 0 : i32
    %c0_i32_0 = arith.constant 0 : i32
    %c0_i32_1 = arith.constant 0 : i32
    return %c0_i32, %c0_i32_0 : i32, i32
  }
  func.func @transform_16(%arg0: i32) -> (i32, i32) {
    %c0_i32 = arith.constant 0 : i32
    %c0_i32_0 = arith.constant 0 : i32
    %c0_i32_1 = arith.constant 0 : i32
    return %c0_i32, %c0_i32_0 : i32, i32
  }
  func.func @transform_17(%arg0: i32) -> (i32, i32) {
    %c0_i32 = arith.constant 0 : i32
    %c0_i32_0 = arith.constant 0 : i32
    %c0_i32_1 = arith.constant 0 : i32
    return %c0_i32, %c0_i32_0 : i32, i32
  }
  func.func @transform_18(%arg0: i32) -> (i32, i32) {
    %c0_i32 = arith.constant 0 : i32
    %c0_i32_0 = arith.constant 0 : i32
    return %arg0, %c0_i32 : i32, i32
  }
}

</mosaic_0001>

<bundles_post_ra>
// kernel: tpu_custom_call.1
= control target key start
LH: loop header
LB: loop body
LE: loop exit
PB: predicated region body
PF: predicated region fallthrough
CT: control target
= control target key end

     0   :  { %v900_v0 = vmov 0   ;;  %v901_v6 = vmov 0.0   ;;  %vm902_vm0 = vmmov 0   ;;  %vm402_vm1 = vcmask 64512   ;;  %s1188_s1 = inlined_call_operand.vmem [shape: s32[8,1], index: 1, kind: input, shape index: {}]   ;;  %s1189_s0 = inlined_call_operand.vmem [shape: s32[8,1], index: 0, kind: input, shape index: {}]   ;;  %s1190_s2 = inlined_call_operand.vmem [shape: s32[8,1], index: 2, kind: input, shape index: {}]   ;;  %s1191_s3 = inlined_call_operand.vmem [shape: s32[8,1], index: 3, kind: input, shape index: {}]   ;;  %s1192_s8 = inlined_call_operand.vmem [shape: f32[16,128], index: 8, kind: input, shape index: {}]   ;;  %s1193_s12 = inlined_call_operand.vmem [shape: f32[8,128], index: 12, kind: input, shape index: {}]   ;;  %s1194_s5 = inlined_call_operand.vmem [shape: f32[8,8], index: 5, kind: input, shape index: {}]   ;;  %s1195_s7 = inlined_call_operand.vmem [shape: f32[56,128], index: 7, kind: input, shape index: {}]   ;;  %s1196_s9 = inlined_call_operand.vmem [shape: f32[24,128], index: 9, kind: input, shape index: {}]   ;;  %s1197_s10 = inlined_call_operand.vmem [shape: f32[16,128], index: 10, kind: input, shape index: {}]   ;;  %s1198_s11 = inlined_call_operand.vmem [shape: f32[8,128], index: 11, kind: input, shape index: {}]   ;;  %s1199_s4 = inlined_call_operand.vmem [shape: f32[8,8], index: 4, kind: input, shape index: {}]   ;;  %s1200_s13 = inlined_call_operand.vmem [shape: f32[8,128], index: 13, kind: input, shape index: {}]   ;;  %s1201_s6 = inlined_call_operand.vmem [shape: f32[8,8], index: 6, kind: input, shape index: {}]   ;;  %s1202_s15 = inlined_call_operand.vmem [shape: f32[128,32], index: 15, kind: input, shape index: {}]   ;;  %s1203_s14 = inlined_call_operand.vmem [shape: f32[1,128], index: 14, kind: input, shape index: {}]   ;;  %s1204_s16 = inlined_call_operand.vmem [shape: f32[1,32], index: 16, kind: input, shape index: {}]   ;;  %s1205_s17 = inlined_call_operand.vmem [shape: f32[1,32], index: 17, kind: input, shape index: {}]   ;;  %s1206_s18 = inlined_call_operand.vmem [shape: f32[8,1], index: 18, kind: output, shape index: {}]  }
   0x1   :  { %1207 = sst [smem:[#allocation2_spill]] %s1188_s1  ;;  %898 = vset.pattern.permute.xlu0 %v900_v0  ;;  %899 = vset.pattern.permute.xlu1 %v900_v0  ;;  %v83_v3 = vld [vmem:[%s1192_s8 + $0x8] sm:$0xff]  ;;  %v317_v5 = vld [vmem:[%s1191_s3] sm:$0xff]  ;;  %v60_v10 = vlaneseq  ;;  %vm84_vm2 = vcmask 130048   ;;  %v74_v13 = vld [vmem:[%s1195_s7 + $0x30] sm:$0xff]  ;;  %vm158_vm5 = vcmask 457728  }
   0x2   :  { %1208 = sst [smem:[#allocation3_spill]] %s1189_s0  ;;  %805 = vmatprep.subr.mxu0 %v901_v6  ;;  %809 = vmatprep.mubr.msk.f32.mxu0 %vm902_vm0, %v901_v6  ;;  %v82_v7 = vld [vmem:[%s1192_s8] sm:$0xff]  ;;  %v73_v15 = vld [vmem:[%s1195_s7 + $0x28] sm:$0xff]  ;;  %v71_v17 = vld [vmem:[%s1195_s7 + $0x18] sm:$0xff]  ;;  %vm242_vm7 = vcmask 195584   ;;  %vm740_vm9 = vcmask 261120  }
   0x3   :  { %1209 = sst [smem:[#allocation4_spill]] %s1190_s2  ;;  %806 = vmatpush3.msra.mxu0 %v83_v3  ;;  %850 = vmatprep.subr.mxu1 %v901_v6  ;;  %v478_v8 = vld [vmem:[%s1193_s12] sm:$0xff]  ;;  %v61_v11 = vand.u32 127, %v60_v10  ;;  %v70_v18 = vld [vmem:[%s1195_s7 + $0x10] sm:$0xff]  ;;  %v69_v20 = vld [vmem:[%s1195_s7 + $0x8] sm:$0xff]  ;;  %vm744_vm10 = vcmask 7168  }
   0x4   :  { %s1210_s29 = sld [smem:[#allocation2_spill]]  ;;  %807 = vmatprep.subr.mxu0 %v901_v6  ;;  %852 = vmatprep.mubr.msk.f32.mxu1 %vm902_vm0, %v901_v6  ;;  %v477_v9 = vld [vmem:[%s1194_s5] sm:$0xff]  ;;  %v241_v23 = vld [vmem:[%s1196_s9 + $0x10] sm:$0xff]  ;;  %v240_v25 = vld [vmem:[%s1196_s9 + $0x8] sm:$0xff] }
   0x5   :  { %s1211_s19 = sld [smem:[#allocation4_spill]]  ;;  %808 = vmatpush3.msra.mxu0 %v82_v7  ;;  %851 = vmatpush3.msra.mxu1 %v478_v8  ;;  %v72_v16 = vld [vmem:[%s1195_s7 + $0x20] sm:$0xff]  ;;  %v325_v29 = vld [vmem:[%s1197_s10 + $0x8] sm:$0xff]  ;;  %v653_v36 = vld [vmem:[%s1202_s15 + $0x78] sm:$0xff] }
   0x6   :  { %s1212_s2 = sld [smem:[#allocation3_spill]]  ;;  %812 = vmatprep.subr.mxu0 %v901_v6  ;;  %853 = vmatmul.mubr.msk.f32.vlgmr.msra.gmra.mxu1 %vm402_vm1, %v477_v9  ;;  %v68_v21 = vld [vmem:[%s1195_s7] sm:$0xff]  ;;  %v652_v37 = vld [vmem:[%s1202_s15 + $0x70] sm:$0xff]  ;;  %v651_v38 = vld [vmem:[%s1202_s15 + $0x68] sm:$0xff] }
   0x7   :  { %860 = vmatprep.subr.mxu1 %v901_v6  ;;  %892 = vmatprep.mubr.msk.f32.mxu1 %vm902_vm0, %v901_v6  ;;  %v239_v26 = vld [vmem:[%s1196_s9] sm:$0xff]  ;;  %v649_v40 = vld [vmem:[%s1202_s15 + $0x58] sm:$0xff]  ;;  %v648_v41 = vld [vmem:[%s1202_s15 + $0x50] sm:$0xff] }
   0x8   :  { %v324_v30 = vld [vmem:[%s1197_s10] sm:$0xff]  ;;  %861 = vmatpush3.msra.mxu1 %v653_v36  ;;  %v647_v42 = vld [vmem:[%s1202_s15 + $0x48] sm:$0xff]  ;;  %v645_v44 = vld [vmem:[%s1202_s15 + $0x38] sm:$0xff] }
   0x9   :  { %v401_v31 = vld [vmem:[%s1198_s11] sm:$0xff]  ;;  %862 = vmatprep.subr.mxu1 %v901_v6  ;;  %v644_v45 = vld [vmem:[%s1202_s15 + $0x30] sm:$0xff]  ;;  %v643_v46 = vld [vmem:[%s1202_s15 + $0x28] sm:$0xff] }
   0xa   :  { %v75_v1 = vld [vmem:[%s1210_s29] sm:$0xff]  ;;  %863 = vmatpush3.msra.mxu1 %v652_v37  ;;  %v641_v50 = vld [vmem:[%s1202_s15 + $0x18] sm:$0xff]  ;;  %v640_v51 = vld [vmem:[%s1202_s15 + $0x10] sm:$0xff] }
   0xb   :  { %v232_v2 = vld [vmem:[%s1211_s19] sm:$0xff]  ;;  %77 = vperm.xlu0 %898, %v75_v1   ;;  %864 = vmatprep.subr.mxu1 %v901_v6  ;;  %v639_v52 = vld [vmem:[%s1202_s15 + $0x8] sm:$0xff] }
   0xc   :  { %234 = vperm.xlu1 %899, %v232_v2   ;;  %v59_v4 = vld [vmem:[%s1212_s2] sm:$0xff]  ;;  %865 = vmatpush3.msra.mxu1 %v651_v38 }
   0xd   :  { %v400_v33 = vld [vmem:[%s1199_s4] sm:$0xff]  ;;  %866 = vmatprep.subr.mxu1 %v901_v6 }
   0xe   :  { %v554_v34 = vld [vmem:[%s1200_s13] sm:$0xff] }
   0xf   :  { %63 = vperm.xlu0 %898, %v59_v4   ;;  %v553_v35 = vld [vmem:[%s1201_s6] sm:$0xff] }
  0x10   :  { %319 = vperm.xlu1 %899, %v317_v5   ;;  %v650_v39 = vld [vmem:[%s1202_s15 + $0x60] sm:$0xff] }
  0x11   :  { %867 = vmatpush3.msra.mxu1 %v650_v39  ;;  %v646_v43 = vld [vmem:[%s1202_s15 + $0x40] sm:$0xff] }
  0x12   :  { %868 = vmatprep.subr.mxu1 %v901_v6  ;;  %v642_v48 = vld [vmem:[%s1202_s15 + $0x20] sm:$0xff] }
  0x13   :  { %869 = vmatpush3.msra.mxu1 %v649_v40  ;;  %v638_v53 = vld [vmem:[%s1202_s15] sm:$0xff] }
  0x14   :  { %870 = vmatprep.subr.mxu1 %v901_v6 }
  0x15   :  { %871 = vmatpush3.msra.mxu1 %v648_v41 }
  0x16   :  { %872 = vmatprep.subr.mxu1 %v901_v6 }
  0x17   :  { %873 = vmatpush3.msra.mxu1 %v647_v42 }
  0x18   :  { %874 = vmatprep.subr.mxu1 %v901_v6 }
  0x19   :  { %875 = vmatpush3.msra.mxu1 %v646_v43 }
  0x1a   :  { %876 = vmatprep.subr.mxu1 %v901_v6 }
  0x1b   :  { %877 = vmatpush3.msra.mxu1 %v645_v44 }
  0x1c   :  { %878 = vmatprep.subr.mxu1 %v901_v6 }
  0x1d   :  { %879 = vmatpush3.msra.mxu1 %v644_v45 }
  0x1e   :  { %880 = vmatprep.subr.mxu1 %v901_v6 }
  0x1f   :  { %881 = vmatpush3.msra.mxu1 %v643_v46 }
  0x20   :  { %882 = vmatprep.subr.mxu1 %v901_v6 }
  0x21   :  { %883 = vmatpush3.msra.mxu1 %v642_v48 }
  0x22   :  { %884 = vmatprep.subr.mxu1 %v901_v6 }
  0x23   :  { %885 = vmatpush3.msra.mxu1 %v641_v50 }
  0x24   :  { %886 = vmatprep.subr.mxu1 %v901_v6 }
  0x25   :  { %887 = vmatpush3.msra.mxu1 %v640_v51 }
  0x26   :  { %888 = vmatprep.subr.mxu1 %v901_v6 }
  0x27   :  { %889 = vmatpush3.msra.mxu1 %v639_v52 }
  0x28   :  { %890 = vmatprep.subr.mxu1 %v901_v6 }
  0x29   :  { %891 = vmatpush3.msra.mxu1 %v638_v53 }
  0x86   :  { %v78_v12 = vpop.permute.xlu0 %77 }
  0x87   :  { %vm79_vm3 = vcmp.eq.s32.totalorder %v78_v12, %v61_v11  ;;  %v235_v22 = vpop.permute.xlu1 %234 }
  0x88   :  { %v751_v14 = vsel %vm79_vm3, 1.0, %v901_v6  ;;  %vm236_vm6 = vcmp.eq.s32.totalorder %v235_v22, %v61_v11 }
  0x89   :  { %810 = vmatmul.mubr.msk.f32.vlgmr.msra.gmra.mxu0 %vm84_vm2, %v751_v14  ;;  %v754_v27 = vsel %vm236_vm6, 1.0, %v901_v6 }
  0x8a   :  { %813 = vmatpush3.msra.mxu0 %v74_v13  ;;  %826 = vmatprep.mubr.msk.f32.mxu0 %vm902_vm0, %v901_v6  ;;  %v64_v19 = vpop.permute.xlu0 %63 }
  0x8b   :  { %814 = vmatprep.subr.mxu0 %v901_v6  ;;  %vm65_vm4 = vcmp.eq.s32.totalorder %v64_v19, %v61_v11  ;;  %v320_v28 = vpop.permute.xlu1 %319 }
  0x8c   :  { %815 = vmatpush3.msra.mxu0 %v73_v15  ;;  %v750_v24 = vsel %vm65_vm4, 1.0, %v901_v6  ;;  %vm321_vm8 = vcmp.eq.s32.totalorder %v320_v28, %v61_v11  ;;  %v762_v11 = vld [vmem:[%s1204_s16] ss:$0 sm:$0xff] }
  0x8d   :  { %816 = vmatprep.subr.mxu0 %v901_v6  ;;  %v756_v32 = vsel %vm321_vm8, 1.0, %v901_v6  ;;  %v763_v15 = vld [vmem:[%s1205_s17] ss:$0 sm:$0xff] }
  0x8e   :  { %817 = vmatpush3.msra.mxu0 %v72_v16 }
  0x8f   :  { %818 = vmatprep.subr.mxu0 %v901_v6 }
  0x90   :  { %819 = vmatpush3.msra.mxu0 %v71_v17 }
  0x91   :  { %820 = vmatprep.subr.mxu0 %v901_v6 }
  0x92   :  { %821 = vmatpush3.msra.mxu0 %v70_v18 }
  0x93   :  { %822 = vmatprep.subr.mxu0 %v901_v6 }
  0x94   :  { %823 = vmatpush3.msra.mxu0 %v69_v20 }
  0x95   :  { %824 = vmatprep.subr.mxu0 %v901_v6 }
  0x96   :  { %825 = vmatpush3.msra.mxu0 %v68_v21 }
  0x97   :  { %827 = vmatmul.mubr.msk.f32.vlgmr.msra.gmra.mxu0 %vm158_vm5, %v750_v24  ;;  %829 = vmatprep.subr.mxu0 %v901_v6 }
  0x98   :  { %830 = vmatpush3.msra.mxu0 %v241_v23  ;;  %835 = vmatprep.mubr.msk.f32.mxu0 %vm902_vm0, %v901_v6 }
  0x99   :  { %831 = vmatprep.subr.mxu0 %v901_v6 }
  0x9a   :  { %832 = vmatpush3.msra.mxu0 %v240_v25 }
  0x9b   :  { %833 = vmatprep.subr.mxu0 %v901_v6 }
  0x9c   :  { %834 = vmatpush3.msra.mxu0 %v239_v26 }
  0x9d   :  { %836 = vmatmul.mubr.msk.f32.vlgmr.msra.gmra.mxu0 %vm242_vm7, %v754_v27  ;;  %838 = vmatprep.subr.mxu0 %v901_v6 }
  0x9e   :  { %839 = vmatpush3.msra.mxu0 %v325_v29  ;;  %842 = vmatprep.mubr.msk.f32.mxu0 %vm902_vm0, %v901_v6 }
  0x9f   :  { %840 = vmatprep.subr.mxu0 %v901_v6 }
  0xa0   :  { %841 = vmatpush3.msra.mxu0 %v324_v30 }
  0xa1   :  { %843 = vmatmul.mubr.msk.f32.vlgmr.msra.gmra.mxu0 %vm84_vm2, %v756_v32  ;;  %845 = vmatprep.subr.mxu0 %v901_v6 }
  0xa2   :  { %846 = vmatpush3.msra.mxu0 %v401_v31  ;;  %847 = vmatprep.mubr.msk.f32.mxu0 %vm902_vm0, %v901_v6 }
  0xa3   :  { %855 = vmatprep.subr.mxu0 %v901_v6 }
  0xa5   :  { %848 = vmatmul.mubr.msk.f32.vlgmr.msra.gmra.mxu0 %vm402_vm1, %v400_v33 }
  0xa6   :  { %856 = vmatpush3.msra.mxu0 %v554_v34  ;;  %857 = vmatprep.mubr.msk.f32.mxu0 %vm902_vm0, %v901_v6  ;;  %v761_v6 = vld [vmem:[%s1203_s14] ss:$0 sm:$0xff] }
  0xa9   :  { %858 = vmatmul.mubr.msk.f32.vlgmr.msra.gmra.mxu0 %vm402_vm1, %v553_v35 }
  0xc6   :  { %v548_v47 = vpop.f32.mrf.mxu1 }
  0xc8   :  { %v854_v49 = vpop.f32.mrf.mxu1 }
 0x149   :  { %v154_v54 = vpop.f32.mrf.mxu0 }
 0x14b   :  { %v811_v55 = vpop.f32.mrf.mxu0 }
 0x157   :  { %v228_v56 = vpop.f32.mrf.mxu0 }
 0x158   :  { %v229_v60 = vadd.f32 %v228_v56, %v154_v54 }
 0x159   :  { %v828_v57 = vpop.f32.mrf.mxu0 }
 0x15d   :  { %v312_v58 = vpop.f32.mrf.mxu0 }
 0x15e   :  { %v316_v62 = vadd.f32 %v312_v58, %v229_v60 }
 0x15f   :  { %v837_v59 = vpop.f32.mrf.mxu0 }
 0x161   :  { %v395_v61 = vpop.f32.mrf.mxu0 }
 0x162   :  { %v399_v0 = vadd.f32 %v395_v61, %v316_v62 }
 0x163   :  { %v844_v63 = vpop.f32.mrf.mxu0 }
 0x165   :  { %v472_v1 = vpop.f32.mrf.mxu0 }
 0x166   :  { %v476_v2 = vadd.f32 %v472_v1, %v399_v0 }
 0x167   :  { %v849_v3 = vpop.f32.mrf.mxu0 }
 0x168   :  { %v552_v4 = vadd.f32 %v548_v47, %v476_v2 }
 0x169   :  { %v624_v5 = vpop.f32.mrf.mxu0 }
 0x16a   :  { %v628_v7 = vadd.f32 %v624_v5, %v552_v4 }
 0x16b   :  { %v859_v8 = vpop.f32.mrf.mxu0 }
 0x16c   :  { %v636_v9 = vadd.f32 %v761_v6, %v628_v7 }
 0x16e   :  { %v637_v10 = vmax.f32 %v636_v9, 0.0 }
 0x170   :  { %893 = vmatmul.mubr.f32.vlgmr.msra.gmra.mxu1 %v637_v10 }
 0x230   :  { %v727_v12 = vpop.f32.mrf.mxu1 }
 0x231   :  { %v728_v13 = vadd.f32 %v762_v11, %v727_v12 }
 0x232   :  { %v894_v14 = vpop.f32.mrf.mxu1 }
 0x233   :  { %v731_v16 = vmax.f32 %v728_v13, 0.0 }
 0x235   :  { %v739_v17 = vmul.f32 %v763_v15, %v731_v16 }
 0x237   :  { %v741_v18 = vsel %vm740_vm9, %v739_v17, 0.0 }
 0x238   :  { %742 = vadd.xlane.f32.xlu0 %v741_v18 }
 0x2c1   :  { %v743_v19 = vpop.xlane.xlu0 %742 }
 0x2c2   :  { %745 = vst.msk [vmem:[%s1206_s18] sm:$0xff] %vm744_vm10, %v743_v19 }

</bundles_post_ra>
